<compile_context>
chip_gen: v7x
topology: tpu7x:2x2x1
jax: 0.10.0
libtpu: 0.0.40
codegen_flags: <defaults>
</compile_context>

<pallas_src>
import functools
import math

import jax
import jax.numpy as jnp
from jax.experimental import pallas as pl
from jax.experimental.pallas import tpu as pltpu

PADDING_TOKEN_INDEX = 0  # deterministic "module parameter"


def _cdiv(a: int, b: int) -> int:
    return -(-a // b)


def _masked_ce_kernel(pred_ref, tgt_ref, out_ref, acc_ref, *,
                      ts, seq_len, vocab, nb_inner, needs_row_mask):
    """One (TS, V) logits tile -> running (TS,1) CE sum in VMEM scratch."""
    p = pl.program_id(0)          # parallel sequence slice
    i = pl.program_id(1)          # block within the slice (reduction axis)

    @pl.when(i == 0)
    def _init():
        acc_ref[...] = jnp.zeros_like(acc_ref)

    pred = pred_ref[...]                                  # (TS, V) model dtype
    tgt = tgt_ref[...]                                    # (TS, 1) int32
    keep = tgt != PADDING_TOKEN_INDEX                     # (TS, 1) bool

    # log-sum-exp over the RAW logits (all math in f32; padded rows are fixed
    # up by the per-row log(V) select below, so no (TS,V) masking pass).
    pred_f32 = pred.astype(jnp.float32)
    row_max = jnp.max(pred_f32, axis=-1, keepdims=True)   # (TS, 1)
    sum_exp = jnp.sum(jnp.exp(pred_f32 - row_max), axis=-1, keepdims=True)

    # One-hot gather of the target logit, kept in the input dtype (bf16 packs
    # two per lane on v6e/v7x); exactly one nonzero survives -> lossless.
    col = jax.lax.broadcasted_iota(jnp.int32, (1, vocab), 1)
    picked = jnp.sum(
        jnp.where(col == tgt, pred, jnp.zeros((), pred.dtype)),
        axis=-1, keepdims=True).astype(jnp.float32)       # (TS, 1)

    ce = jnp.log(sum_exp) + row_max - picked              # (TS, 1)
    # padded rows: the module zeroes their logits -> CE is exactly log(V)
    per_token = jnp.where(keep, ce, jnp.float32(math.log(vocab)))

    if needs_row_mask:
        # Rows past the true sequence length (ragged last block / clamped
        # extra block of the last parallel slice) must not count.  Garbage in
        # those rows stays confined: all reductions are per-row and this
        # select discards any Inf/NaN before it reaches the accumulator.
        blk = p * nb_inner + i
        row = blk * ts + jax.lax.broadcasted_iota(jnp.int32, per_token.shape, 0)
        per_token = jnp.where(row < seq_len, per_token, jnp.float32(0.0))

    acc_ref[...] = acc_ref[...] + per_token               # vector add only

    @pl.when(i == pl.num_programs(1) - 1)
    def _finalize():
        # single cross-sublane reduce per slice; mean scale folded in here.
        partial = jnp.sum(acc_ref[...]) * jnp.float32(1.0 / seq_len)
        out_ref[...] = jnp.broadcast_to(partial, out_ref.shape).astype(jnp.float32)


def _tpu_vmem_capacity_bytes() -> int:
    try:
        info = pltpu.get_tpu_info()
        cap = getattr(info, "vmem_capacity_bytes", None)
        if cap:
            return int(cap)
    except Exception:
        pass
    return 64 * 1024 * 1024   # conservative fallback (v7x per-TensorCore)


def _choose_row_tile(seq_len: int, vocab: int, itemsize: int, vmem_cap: int) -> int:
    # Generation-aware budget: v5e/v6e have 128 MiB physical VMEM -> big tiles
    # amortize the ~600-cycle per-step overhead and give large DMA bursts;
    # v7x has only 64 MiB per TensorCore -> stay well under it.
    if vmem_cap <= 64 * 1024 * 1024:
        budget = 20 * 1024 * 1024
    else:
        budget = 48 * 1024 * 1024
    # 2 double-buffered input tiles + ~4 live f32 (TS,V) intermediates.
    per_row = vocab * (2 * itemsize + 4 * 4)
    ts = budget // max(per_row, 1)
    ts = int(max(8, min(1024, ts)) // 8 * 8)
    seq_pad8 = _cdiv(seq_len, 8) * 8
    return min(ts, seq_pad8)


def masked_cross_entropy_loss(prediction: jax.Array, target: jax.Array,
                              *, row_tile: int | None = None) -> jax.Array:
    """prediction: (S, V) logits (bf16/f32); target: (S,) int -> scalar f32 loss."""
    S, V = prediction.shape
    itemsize = jnp.dtype(prediction.dtype).itemsize
    tgt2d = target.astype(jnp.int32).reshape(S, 1)

    vmem_cap = _tpu_vmem_capacity_bytes()
    ts = row_tile if row_tile is not None else _choose_row_tile(S, V, itemsize, vmem_cap)
    ts = max(8, (int(ts) // 8) * 8)

    nb_total = _cdiv(S, ts)                    # total (TS,V) blocks, ragged last OK
    n_par = 2 if nb_total >= 2 else 1          # second TensorCore on v7x; harmless elsewhere
    nb_inner = _cdiv(nb_total, n_par)
    needs_row_mask = (n_par * nb_inner * ts != S)

    # Block index for (parallel slice p, inner step i); clamp keeps every DMA
    # in bounds when n_par*nb_inner > nb_total (the duplicated block's rows are
    # zeroed by the in-kernel row mask).
    if n_par * nb_inner == nb_total:
        def blk_idx(p, i):
            return p * nb_inner + i
    else:
        last_block = nb_total - 1

        def blk_idx(p, i):
            return jnp.minimum(p * nb_inner + i, last_block)

    # TODO(synk): for LLM-scale vocabularies (V >= 32K) add an inner "arbitrary"
    # V axis with online-LSE (TS,1) scratch so a full (TS, V) tile never has to
    # fit VMEM at once (keeps TS >= 128 with lane-dense DMAs).

    pred_tile = ts * V * itemsize
    f32_tile = ts * V * 4
    vmem_needed = 2 * pred_tile + 4 * f32_tile + 4 * ts * 128 * 4 + 64 * 1024
    headroom_cap = max(vmem_cap - 16 * 1024 * 1024, 32 * 1024 * 1024)
    vmem_limit = int(min(headroom_cap, max(32 * 1024 * 1024, 2 * vmem_needed)))

    kernel = functools.partial(
        _masked_ce_kernel, ts=ts, seq_len=S, vocab=V,
        nb_inner=nb_inner, needs_row_mask=needs_row_mask)

    out = pl.pallas_call(
        kernel,
        out_shape=jax.ShapeDtypeStruct((n_par, 8, 128), jnp.float32),
        grid_spec=pltpu.PrefetchScalarGridSpec(
            num_scalar_prefetch=0,
            grid=(n_par, nb_inner),
            in_specs=[
                pl.BlockSpec((ts, V), lambda p, i: (blk_idx(p, i), 0)),   # logits tile
                pl.BlockSpec((ts, 1), lambda p, i: (blk_idx(p, i), 0)),   # target column
            ],
            out_specs=pl.BlockSpec((1, 8, 128), lambda p, i: (p, 0, 0)),  # per-slice partial
            scratch_shapes=[pltpu.VMEM((ts, 1), jnp.float32)],            # CE accumulator
        ),
        compiler_params=pltpu.CompilerParams(
            dimension_semantics=("parallel", "arbitrary"),
            vmem_limit_bytes=vmem_limit,
        ),
        cost_estimate=pl.CostEstimate(
            flops=6 * S * V,
            transcendentals=S * V,
            bytes_accessed=S * V * itemsize + S * 4 + n_par * 8 * 128 * 4,
        ),
    )(prediction, tgt2d)

    # Each slice already carries the 1/S mean factor; sum the partials.
    return jnp.sum(out[:, 0, 0])


def _reference_loss(prediction, target):
    # pure-JAX reference of the exact PyTorch semantics (CrossEntropyLoss, mean)
    keep = (target != PADDING_TOKEN_INDEX)
    tgt = (target * keep).astype(jnp.int32)
    pred = keep[:, None].astype(jnp.float32) * prediction.astype(jnp.float32)
    logz = jax.nn.logsumexp(pred, axis=-1)
    picked = jnp.take_along_axis(pred, tgt[:, None], axis=-1)[:, 0]
    return jnp.mean(logz - picked)


if __name__ == "__main__":
    key = jax.random.PRNGKey(0)
    k1, k2, k3, k4 = jax.random.split(key, 4)

    # Small canonical case (sequence=8, logits=32); single block, no masking.
    S, V = 8, 32
    prediction = jax.random.normal(k1, (S, V), dtype=jnp.float32)
    target = jax.random.randint(k2, (S,), 0, V, dtype=jnp.int32)  # 0 == padding
    loss = masked_cross_entropy_loss(prediction, target)
    jax.block_until_ready(loss)
    ref = _reference_loss(prediction, target)
    assert jnp.isfinite(loss), loss
    assert jnp.allclose(loss, ref, rtol=1e-5, atol=1e-5), (loss, ref)

    # Ragged multi-block case: exercises the in-kernel row mask (S % ts != 0),
    # the clamped extra block of the second parallel slice, and the two-slice
    # partial-sum reduction.
    S2, V2 = 300, 128
    prediction2 = jax.random.normal(k3, (S2, V2), dtype=jnp.float32)
    target2 = jax.random.randint(k4, (S2,), 0, V2, dtype=jnp.int32)
    loss2 = masked_cross_entropy_loss(prediction2, target2, row_tile=64)
    jax.block_until_ready(loss2)
    ref2 = _reference_loss(prediction2, target2)
    assert jnp.isfinite(loss2), loss2
    assert jnp.allclose(loss2, ref2, rtol=1e-5, atol=1e-5), (loss2, ref2)

    # bf16 logits path (gather stays in bf16, LSE math in f32).
    prediction3 = prediction2.astype(jnp.bfloat16)
    loss3 = masked_cross_entropy_loss(prediction3, target2, row_tile=64)
    jax.block_until_ready(loss3)
    ref3 = _reference_loss(prediction3, target2)
    assert jnp.allclose(loss3, ref3, rtol=1e-4, atol=1e-4), (loss3, ref3)

    print("KERNEL_OK")
</pallas_src>

<mosaic_0001>
module attributes {stable_mosaic.version = 11 : i64} {
  func.func @_masked_ce_kernel(%arg0: i32, %arg1: i32, %arg2: memref<8x32xf32, #tpu.memory_space<vmem>>, %arg3: memref<8x1xi32, #tpu.memory_space<vmem>>, %arg4: memref<1x8x128xf32, #tpu.memory_space<vmem>>, %arg5: memref<8x1xf32, #tpu.memory_space<vmem>>) attributes {dimension_semantics = [#tpu.dimension_semantics<parallel>, #tpu.dimension_semantics<arbitrary>], iteration_bounds = array<i64: 1, 1>, scalar_prefetch = 0 : i64, scratch_operands = 1 : i64, tpu.core_type = #tpu.core_type<tc>, window_params = [{transform_indices = @transform_0, window_bounds = array<i64: 8, 32>}, {transform_indices = @transform_1, window_bounds = array<i64: 8, 1>}, {transform_indices = @transform_2, window_bounds = array<i64: 1, 8, 128>}]} {
    %c0_i32 = arith.constant 0 : i32
    %0 = arith.cmpi eq, %arg1, %c0_i32 : i32
    %1 = arith.extui %0 : i1 to i32
    %c0_i32_0 = arith.constant 0 : i32
    %2 = arith.cmpi ne, %1, %c0_i32_0 : i32
    scf.if %2 {
      %cst_15 = arith.constant 0.000000e+00 : f32
      %33 = vector.broadcast %cst_15 : f32 to vector<8x1xf32>
      %c0_16 = arith.constant 0 : index
      %c0_17 = arith.constant 0 : index
      %34 = vector.load %arg5[%c0_16, %c0_17] : memref<8x1xf32, #tpu.memory_space<vmem>>, vector<8x1xf32>
      tpu.vector_store %arg5[%c0_16, %c0_17], %33 {strides = array<i32>} : memref<8x1xf32, #tpu.memory_space<vmem>>, vector<8x1xf32>,
    } else {
    }
    %c0 = arith.constant 0 : index
    %c0_1 = arith.constant 0 : index
    %3 = vector.load %arg2[%c0, %c0_1] : memref<8x32xf32, #tpu.memory_space<vmem>>, vector<8x32xf32>
    %c0_2 = arith.constant 0 : index
    %c0_3 = arith.constant 0 : index
    %4 = vector.load %arg3[%c0_2, %c0_3] : memref<8x1xi32, #tpu.memory_space<vmem>>, vector<8x1xi32>
    %c0_i32_4 = arith.constant 0 : i32
    %5 = vector.broadcast %c0_i32_4 : i32 to vector<8x1xi32>
    %6 = arith.cmpi ne, %4, %5 : vector<8x1xi32>
    %cst = arith.constant dense<0xFF800000> : vector<8xf32>
    %7 = vector.multi_reduction <maximumf>, %3, %cst [1] : vector<8x32xf32> to vector<8xf32>
    %8 = vector.shape_cast %7 : vector<8xf32> to vector<8x1xf32>
    %9 = vector.broadcast %8 : vector<8x1xf32> to vector<8x32xf32>
    %10 = arith.subf %3, %9 : vector<8x32xf32>
    %11 = math.exp %10 : vector<8x32xf32>
    %cst_5 = arith.constant dense<0.000000e+00> : vector<8xf32>
    %12 = vector.multi_reduction <add>, %11, %cst_5 [1] : vector<8x32xf32> to vector<8xf32>
    %13 = vector.shape_cast %12 : vector<8xf32> to vector<8x1xf32>
    %14 = tpu.iota {dimensions = array<i32: 1>} : vector<1x32xi32>
    %15 = vector.broadcast %14 : vector<1x32xi32> to vector<8x32xi32>
    %16 = vector.broadcast %4 : vector<8x1xi32> to vector<8x32xi32>
    %17 = arith.cmpi eq, %15, %16 : vector<8x32xi32>
    %cst_6 = arith.constant 0.000000e+00 : f32
    %18 = vector.broadcast %cst_6 : f32 to vector<8x32xf32>
    %19 = arith.select %17, %3, %18 : vector<8x32xi1>, vector<8x32xf32>
    %cst_7 = arith.constant dense<0.000000e+00> : vector<8xf32>
    %20 = vector.multi_reduction <add>, %19, %cst_7 [1] : vector<8x32xf32> to vector<8xf32>
    %21 = vector.shape_cast %20 : vector<8xf32> to vector<8x1xf32>
    %22 = math.log %13 : vector<8x1xf32>
    %23 = arith.addf %22, %8 : vector<8x1xf32>
    %24 = arith.subf %23, %21 : vector<8x1xf32>
    %cst_8 = arith.constant 3.46573591 : f32
    %25 = vector.broadcast %cst_8 : f32 to vector<8x1xf32>
    %26 = arith.select %6, %24, %25 : vector<8x1xi1>, vector<8x1xf32>
    %c0_9 = arith.constant 0 : index
    %c0_10 = arith.constant 0 : index
    %27 = vector.load %arg5[%c0_9, %c0_10] : memref<8x1xf32, #tpu.memory_space<vmem>>, vector<8x1xf32>
    %28 = arith.addf %27, %26 : vector<8x1xf32>
    %c0_11 = arith.constant 0 : index
    %c0_12 = arith.constant 0 : index
    %29 = vector.load %arg5[%c0_11, %c0_12] : memref<8x1xf32, #tpu.memory_space<vmem>>, vector<8x1xf32>
    tpu.vector_store %arg5[%c0_11, %c0_12], %28 {strides = array<i32>} : memref<8x1xf32, #tpu.memory_space<vmem>>, vector<8x1xf32>,
    %c0_i32_13 = arith.constant 0 : i32
    %30 = arith.cmpi eq, %arg1, %c0_i32_13 : i32
    %31 = arith.extui %30 : i1 to i32
    %c0_i32_14 = arith.constant 0 : i32
    %32 = arith.cmpi ne, %31, %c0_i32_14 : i32
    scf.if %32 {
      %c0_15 = arith.constant 0 : index
      %c0_16 = arith.constant 0 : index
      %33 = vector.load %arg5[%c0_15, %c0_16] : memref<8x1xf32, #tpu.memory_space<vmem>>, vector<8x1xf32>
      %34 = vector.shape_cast %33 : vector<8x1xf32> to vector<1x8x1xf32>
      %cst_17 = arith.constant dense<0.000000e+00> : vector<1xf32>
      %35 = vector.multi_reduction <add>, %34, %cst_17 [1, 2] : vector<1x8x1xf32> to vector<1xf32>
      %36 = vector.shape_cast %35 : vector<1xf32> to vector<1x1x1xf32>
      %37 = vector.extract %36[0, 0, 0] : f32 from vector<1x1x1xf32>
      %cst_18 = arith.constant 1.250000e-01 : f32
      %38 = arith.mulf %37, %cst_18 : f32
      %39 = vector.broadcast %38 : f32 to vector<1x8x128xf32>
      %c0_19 = arith.constant 0 : index
      %c0_20 = arith.constant 0 : index
      %c0_21 = arith.constant 0 : index
      %40 = vector.load %arg4[%c0_19, %c0_20, %c0_21] : memref<1x8x128xf32, #tpu.memory_space<vmem>>, vector<1x8x128xf32>
      tpu.vector_store %arg4[%c0_19, %c0_20, %c0_21], %39 {strides = array<i32>} : memref<1x8x128xf32, #tpu.memory_space<vmem>>, vector<1x8x128xf32>,
    } else {
    }
    return
  }
  func.func @transform_0(%arg0: i32, %arg1: i32) -> (i32, i32) {
    %c1_i32 = arith.constant 1 : i32
    %0 = arith.muli %arg0, %c1_i32 : i32
    %1 = arith.addi %0, %arg1 : i32
    %c0_i32 = arith.constant 0 : i32
    %c0_i32_0 = arith.constant 0 : i32
    return %1, %c0_i32 : i32, i32
  }
  func.func @transform_1(%arg0: i32, %arg1: i32) -> (i32, i32) {
    %c1_i32 = arith.constant 1 : i32
    %0 = arith.muli %arg0, %c1_i32 : i32
    %1 = arith.addi %0, %arg1 : i32
    %c0_i32 = arith.constant 0 : i32
    %c0_i32_0 = arith.constant 0 : i32
    return %1, %c0_i32 : i32, i32
  }
  func.func @transform_2(%arg0: i32, %arg1: i32) -> (i32, i32, i32) {
    %c0_i32 = arith.constant 0 : i32
    %c0_i32_0 = arith.constant 0 : i32
    %c0_i32_1 = arith.constant 0 : i32
    return %arg0, %c0_i32, %c0_i32_0 : i32, i32, i32
  }
}

</mosaic_0001>

<bundles_post_ra>
// kernel: tpu_custom_call.1
= control target key start
LH: loop header
LB: loop body
LE: loop exit
PB: predicated region body
PF: predicated region fallthrough
CT: control target
= control target key end

     0   :  { %vm55_vm0 = vcmask 261120   ;;  %s203_s0 = inlined_call_operand.vmem [shape: f32[8,32], index: 0, kind: input, shape index: {}]   ;;  %s204_s1 = inlined_call_operand.vmem [shape: s32[8,1], index: 1, kind: input, shape index: {}]   ;;  %s205_s2 = inlined_call_operand.hbm [shape: f32[1,8,128], index: 2, kind: output, shape index: {}]  }
   0x1   :  { %v52_v0 = vld [vmem:[%s203_s0] sm:$0xff] }
   0x2   :  { %7 = vsyncpa [#allocation4], 0  ;;  %v56_v1 = vsel %vm55_vm0, %v52_v0, -inf  ;;  %v161_v2 = vmov 0   ;;  %v53_v3 = vld [vmem:[%s204_s1] sm:$0xff]  ;;  %v65_v7 = vlaneseq  ;;  %vm50_vm2 = vcmask 7168  }
   0x3   :  { %132 = vset.pattern.permute.xlu0 %v161_v2  ;;  %v162_v14 = vmov 0.0   ;;  %vm54_vm3 = vcmp.ne.s32.totalorder %v53_v3, 0  ;;  %s163_s0 = smov [#allocation3]  }
   0x4   :  { %57 = vmax.xlane.f32.xlu0 %v56_v1  ;;  %v66_v8 = vand.u32 127, %v65_v7  ;;  %51 = vst.msk [vmem:[#allocation2] sm:$0xff] %vm50_vm2, %v162_v14  ;;  %s107_s1 = sshll.u32 %s163_s0, 4  ;;  %s108_s1 = int_to_ptr.vmem [resolvable:$true] %s107_s1 }
   0x5   :  { %s137_s15 = scalar_lea.vmem %s108_s1, 128  ;;  %p142_p1 = scmp.lt.s32.totalorder %s108_s1, %s108_s1 }
   0x6   :  { %p138_p0 = scmp.ne.s32.totalorder %s108_s1, %s137_s15  ;;  %p143_p2 = scmp.lt.s32.totalorder %s137_s15, %s137_s15 }
   0x8   :  { %p144_p3 = por %p143_p2, %p142_p1 }
   0xa   :  { %p145_p4 = pnand %p144_p3, %p138_p0 }
   0xb   :  { %v80_v21 = vld [vmem:[#allocation2] sm:$0xff] }
  0x1a   :  { %68 = vperm.xlu0 %132, %v53_v3  }
  0x91   :  { %v58_v4 = vpop.xlane.xlu0 %57 }
  0x92   :  { %v59_v5 = vsub.f32 %v52_v0, %v58_v4 }
  0x94   :  { %v60_v6 = vmul.f32 1.442695, %v59_v5 }
  0x96   :  { %133 = vpow2.f32 %v60_v6 }
  0x99   :  { %v69_v9 = vpop.permute.xlu0 %68 }
  0x9a   :  { %vm70_vm1 = vcmp.eq.s32.totalorder %v66_v8, %v69_v9 }
  0x9b   :  { %v71_v11 = vsel %vm70_vm1, %v52_v0, 0.0 }
  0x9c   :  { %v72_v13 = vsel %vm55_vm0, %v71_v11, 0.0 }
  0xa0   :  { %v134_v10 = vpop.eup %133 }
  0xa1   :  { %v62_v12 = vsel %vm55_vm0, %v134_v10, 0.0 }
  0xa2   :  { %63 = vadd.xlane.f32.xlu1 %v62_v12 }
  0xa6   :  { %73 = vadd.xlane.f32.xlu1 %v72_v13 }
 0x12f   :  { %v64_v15 = vpop.xlane.xlu1 %63 }
 0x130   :  { %135 = vlog2.f32 %v64_v15 }
 0x133   :  { %v74_v18 = vpop.xlane.xlu1 %73 }
 0x13a   :  { %v136_v16 = vpop.eup %135 }
 0x13b   :  { %v76_v17 = vmul.f32 0.6931472, %v136_v16 }
 0x13d   :  { %v77_v19 = vadd.f32 %v76_v17, %v58_v4 }
 0x13f   :  { %v78_v20 = vsub.f32 %v77_v19, %v74_v18 }
 0x141   :  { %v79_v22 = vsel %vm54_vm3, %v78_v20, 3.465736 }
 0x142   :  { %v81_v23 = vadd.f32 %v80_v21, %v79_v22 }
 0x144   :  { %83 = vst.msk [vmem:[#allocation2] sm:$0xff] %vm50_vm2, %v81_v23 }
 0x14b   :  { %v87_v24 = vld [vmem:[#allocation2] sm:$0xff] }
 0x14c   :  { %v88_v25 = vsel %vm50_vm2, %v87_v24, 0.0 }
 0x14d   :  { %89 = vadd.xlane.f32.xlu1 %v88_v25 }
 0x1da   :  { %v90_v26 = vpop.xlane.xlu1 %89 }
 0x1db   :  { %v91_v27 = vrot.slane %v90_v26, 4 }
 0x1dd   :  { %v92_v28 = vadd.f32 %v91_v27, %v90_v26 }
 0x1df   :  { %v93_v29 = vrot.slane %v92_v28, 2 }
 0x1e1   :  { %v94_v30 = vadd.f32 %v93_v29, %v92_v28 }
 0x1e3   :  { %v95_v31 = vrot.slane %v94_v30, 1 }
 0x1e5   :  { %v96_v32 = vadd.f32 %v95_v31, %v94_v30 }
 0x1e7   :  { %127 = vpush %v96_v32 }
 0x218   :  { %s128_s13 = spop %127 }
 0x219   :  { %s98_s14 = smul.f32 0.125, %s128_s13 }
 0x21b   :  { %v99_v33 = vstv %s98_s14 }
 0x21c   :  { %100 = vst [vmem:[#allocation3] sm:$0xff] %v99_v33 }
 0x21d   :  { %148 = shalt.err (!%p145_p4)
}
 0x21e   :  { %s149_s18 = scalar_lea.hbm %s205_s2, 128 }
 0x21f   :  { %p150_p5 = scmp.ne.s32.totalorder %s205_s2, %s149_s18  ;;  %p153_p6 = scmp.lt.u32.totalorder %s149_s18, %s205_s2 }
 0x221   :  { %p155_p7 = pnand %p153_p6, %p150_p5 }
 0x223   :  { %158 = shalt.err (!%p155_p7)
}
 0x224   :  { %110 = dma.vmem_to_hbm [thread:$0]  %s108_s1, 128, %s205_s2, [#allocation4]  }
 0x225   :  { %159 = dma.done.wait [#allocation4], 128  }
 0x226   :  { %160 = vsyncadd [#allocation4], 4294967168 }
 0x227   :  { %114 = vsyncpa [#allocation4], 1 }

</bundles_post_ra>
